<compile_context>
chip_gen: v6e
topology: v6e:2x2x1
jax: 0.10.0
libtpu: 0.0.40
codegen_flags: <defaults>
</compile_context>

<pallas_src>
import functools

import jax
import jax.numpy as jnp
from jax.experimental import pallas as pl
from jax.experimental.pallas import tpu as pltpu

PAD = 128          # lane-padded feature width for every layer
NUM_LAYERS = 4
BIAS_ROWS = 8      # sublane-aligned slab appended to each weight; row 0 = bias


def _round_up(n, m):
    return ((n + m - 1) // m) * m


def fcnet_kernel(x_ref, params_ref, o_ref):
    """x_ref: (tile_b, 128); params_ref: (4, 136, 128); o_ref: (tile_b, 128)."""
    h = x_ref[...]
    for l in range(NUM_LAYERS):
        w = params_ref[l, 0:PAD, :]                               # (128, 128)
        b = params_ref[l, PAD:PAD + 1, :].astype(jnp.float32)     # (1, 128)
        h = jnp.dot(h.astype(w.dtype), w,
                    preferred_element_type=jnp.float32)
        h = h + b
        if l < NUM_LAYERS - 1:
            h = jnp.maximum(h, 0.0)
    o_ref[...] = h.astype(o_ref.dtype)


def pack_params(params, compute_dtype=jnp.float32):
    """Pack [(W,b)] (W: (fan_in, fan_out), b: (fan_out,) or (1,fan_out)) into
    one zero-padded blob of shape (NUM_LAYERS, PAD + BIAS_ROWS, PAD)."""
    layers = []
    for (w, b) in params:
        fin, fout = w.shape
        wp = jnp.zeros((PAD, PAD), compute_dtype).at[:fin, :fout].set(
            w.astype(compute_dtype))
        bp = jnp.zeros((BIAS_ROWS, PAD), compute_dtype).at[0, :fout].set(
            jnp.reshape(b, (-1,)).astype(compute_dtype))
        layers.append(jnp.concatenate([wp, bp], axis=0))          # (136, 128)
    return jnp.stack(layers, axis=0)                              # (4, 136, 128)


@functools.partial(jax.jit, static_argnames=("tile_b", "compute_dtype"))
def _fcnet_padded_call(xp, blob, tile_b, compute_dtype):
    b_pad = xp.shape[0]
    grid = (b_pad // tile_b,)
    return pl.pallas_call(
        fcnet_kernel,
        out_shape=jax.ShapeDtypeStruct((b_pad, PAD), jnp.float32),
        grid_spec=pltpu.PrefetchScalarGridSpec(
            num_scalar_prefetch=0,
            grid=grid,
            in_specs=[
                pl.BlockSpec((tile_b, PAD), lambda i: (i, 0)),
                # One full-array param blob; constant index_map keeps it
                # resident in VMEM across all batch tiles.
                pl.BlockSpec(blob.shape, lambda i: (0, 0, 0)),
            ],
            out_specs=pl.BlockSpec((tile_b, PAD), lambda i: (i, 0)),
        ),
        compiler_params=pltpu.CompilerParams(
            dimension_semantics=("parallel",),
            vmem_limit_bytes=32 * 1024 * 1024,   # safe on v5e/v6e and v7x (64 MiB)
        ),
    )(xp, blob)


def fcnet_forward(x, params, *, tile_b=512, compute_dtype=jnp.float32):
    """x: (B, input_features). params: list of 4 (W, b), W shape (in, out)."""
    B, F = x.shape
    out_features = params[-1][0].shape[1]

    # Batch tiling: tile_b multiple of 8, no bigger than the (8-rounded) batch.
    b8 = _round_up(B, 8)
    tb = min(_round_up(tile_b, 8), b8)
    b_pad = _round_up(b8, tb)

    # Lane-pad X to (b_pad, 128); padded rows/lanes are zero.
    xp = jnp.zeros((b_pad, PAD), compute_dtype).at[:B, :F].set(
        x.astype(compute_dtype))
    blob = pack_params(params, compute_dtype)

    out_padded = _fcnet_padded_call(xp, blob, tb, compute_dtype)
    return out_padded[:B, :out_features].astype(x.dtype)


def init_linear(key, fan_in, fan_out):
    """Mimics nn.Linear's uniform(-1/sqrt(fan_in), 1/sqrt(fan_in)) init.
    Returns W of shape (fan_in, fan_out) (transposed vs PyTorch) and b (fan_out,)."""
    kw, kb = jax.random.split(key)
    bound = 1.0 / jnp.sqrt(jnp.float32(fan_in))
    w = jax.random.uniform(kw, (fan_in, fan_out), jnp.float32, -bound, bound)
    b = jax.random.uniform(kb, (fan_out,), jnp.float32, -bound, bound)
    return w, b


if __name__ == "__main__":
    input_features = 16
    output_features = 4
    batch = 8

    key = jax.random.PRNGKey(0)
    k_x, k1, k2, k3, k4 = jax.random.split(key, 5)

    x = jax.random.normal(k_x, (batch, input_features), jnp.float32)

    params = [
        init_linear(k1, input_features, 90),
        init_linear(k2, 90, 45),
        init_linear(k3, 45, 20),
        init_linear(k4, 20, output_features),
    ]

    out = fcnet_forward(x, params)
    out = jax.block_until_ready(out)

    # Pure-JAX reference check (same forward semantics as the PyTorch module).
    ref = x
    for i, (w, b) in enumerate(params):
        ref = ref @ w + b
        if i < 3:
            ref = jnp.maximum(ref, 0.0)

    assert out.shape == (batch, output_features)
    assert jnp.allclose(out, ref, atol=1e-5, rtol=1e-5)

    print("KERNEL_OK")
</pallas_src>

<mosaic_0001>
module attributes {stable_mosaic.version = 11 : i64} {
  func.func @fcnet_kernel(%arg0: i32, %arg1: memref<8x128xf32, #tpu.memory_space<vmem>>, %arg2: memref<4x136x128xf32, #tpu.memory_space<vmem>>, %arg3: memref<8x128xf32, #tpu.memory_space<vmem>>) attributes {dimension_semantics = [#tpu.dimension_semantics<parallel>], iteration_bounds = array<i64: 1>, scalar_prefetch = 0 : i64, scratch_operands = 0 : i64, tpu.core_type = #tpu.core_type<tc>, window_params = [{transform_indices = @transform_0, window_bounds = array<i64: 8, 128>}, {pipeline_mode = #tpu.pipeline_mode<synchronous>, transform_indices = @transform_1, window_bounds = array<i64: 4, 136, 128>}, {transform_indices = @transform_2, window_bounds = array<i64: 8, 128>}]} {
    %c0 = arith.constant 0 : index
    %c0_0 = arith.constant 0 : index
    %0 = vector.load %arg1[%c0, %c0_0] : memref<8x128xf32, #tpu.memory_space<vmem>>, vector<8x128xf32>
    %c0_1 = arith.constant 0 : index
    %c0_2 = arith.constant 0 : index
    %c0_3 = arith.constant 0 : index
    %1 = vector.load %arg2[%c0_1, %c0_2, %c0_3] : memref<4x136x128xf32, #tpu.memory_space<vmem>>, vector<1x128x128xf32>
    %2 = vector.shape_cast %1 : vector<1x128x128xf32> to vector<128x128xf32>
    %c0_4 = arith.constant 0 : index
    %c128 = arith.constant 128 : index
    %c0_5 = arith.constant 0 : index
    %3 = vector.load %arg2[%c0_4, %c128, %c0_5] : memref<4x136x128xf32, #tpu.memory_space<vmem>>, vector<1x1x128xf32>
    %4 = vector.shape_cast %3 : vector<1x1x128xf32> to vector<1x128xf32>
    %cst = arith.constant dense<0.000000e+00> : vector<8x128xf32>
    %5 = tpu.matmul %0, %2, %cst {dimension_numbers = #tpu.dot_dimension_numbers<[1], [0], [0], [1], [0, 0, 1, 1], [], []>} : vector<8x128xf32>, vector<128x128xf32>, vector<8x128xf32> -> vector<8x128xf32>
    %6 = vector.broadcast %4 : vector<1x128xf32> to vector<8x128xf32>
    %7 = arith.addf %5, %6 : vector<8x128xf32>
    %cst_6 = arith.constant 0.000000e+00 : f32
    %8 = vector.broadcast %cst_6 : f32 to vector<8x128xf32>
    %9 = arith.maximumf %7, %8 : vector<8x128xf32>
    %c1 = arith.constant 1 : index
    %c0_7 = arith.constant 0 : index
    %c0_8 = arith.constant 0 : index
    %10 = vector.load %arg2[%c1, %c0_7, %c0_8] : memref<4x136x128xf32, #tpu.memory_space<vmem>>, vector<1x128x128xf32>
    %11 = vector.shape_cast %10 : vector<1x128x128xf32> to vector<128x128xf32>
    %c1_9 = arith.constant 1 : index
    %c128_10 = arith.constant 128 : index
    %c0_11 = arith.constant 0 : index
    %12 = vector.load %arg2[%c1_9, %c128_10, %c0_11] : memref<4x136x128xf32, #tpu.memory_space<vmem>>, vector<1x1x128xf32>
    %13 = vector.shape_cast %12 : vector<1x1x128xf32> to vector<1x128xf32>
    %cst_12 = arith.constant dense<0.000000e+00> : vector<8x128xf32>
    %14 = tpu.matmul %9, %11, %cst_12 {dimension_numbers = #tpu.dot_dimension_numbers<[1], [0], [0], [1], [0, 0, 1, 1], [], []>} : vector<8x128xf32>, vector<128x128xf32>, vector<8x128xf32> -> vector<8x128xf32>
    %15 = vector.broadcast %13 : vector<1x128xf32> to vector<8x128xf32>
    %16 = arith.addf %14, %15 : vector<8x128xf32>
    %cst_13 = arith.constant 0.000000e+00 : f32
    %17 = vector.broadcast %cst_13 : f32 to vector<8x128xf32>
    %18 = arith.maximumf %16, %17 : vector<8x128xf32>
    %c2 = arith.constant 2 : index
    %c0_14 = arith.constant 0 : index
    %c0_15 = arith.constant 0 : index
    %19 = vector.load %arg2[%c2, %c0_14, %c0_15] : memref<4x136x128xf32, #tpu.memory_space<vmem>>, vector<1x128x128xf32>
    %20 = vector.shape_cast %19 : vector<1x128x128xf32> to vector<128x128xf32>
    %c2_16 = arith.constant 2 : index
    %c128_17 = arith.constant 128 : index
    %c0_18 = arith.constant 0 : index
    %21 = vector.load %arg2[%c2_16, %c128_17, %c0_18] : memref<4x136x128xf32, #tpu.memory_space<vmem>>, vector<1x1x128xf32>
    %22 = vector.shape_cast %21 : vector<1x1x128xf32> to vector<1x128xf32>
    %cst_19 = arith.constant dense<0.000000e+00> : vector<8x128xf32>
    %23 = tpu.matmul %18, %20, %cst_19 {dimension_numbers = #tpu.dot_dimension_numbers<[1], [0], [0], [1], [0, 0, 1, 1], [], []>} : vector<8x128xf32>, vector<128x128xf32>, vector<8x128xf32> -> vector<8x128xf32>
    %24 = vector.broadcast %22 : vector<1x128xf32> to vector<8x128xf32>
    %25 = arith.addf %23, %24 : vector<8x128xf32>
    %cst_20 = arith.constant 0.000000e+00 : f32
    %26 = vector.broadcast %cst_20 : f32 to vector<8x128xf32>
    %27 = arith.maximumf %25, %26 : vector<8x128xf32>
    %c3 = arith.constant 3 : index
    %c0_21 = arith.constant 0 : index
    %c0_22 = arith.constant 0 : index
    %28 = vector.load %arg2[%c3, %c0_21, %c0_22] : memref<4x136x128xf32, #tpu.memory_space<vmem>>, vector<1x128x128xf32>
    %29 = vector.shape_cast %28 : vector<1x128x128xf32> to vector<128x128xf32>
    %c3_23 = arith.constant 3 : index
    %c128_24 = arith.constant 128 : index
    %c0_25 = arith.constant 0 : index
    %30 = vector.load %arg2[%c3_23, %c128_24, %c0_25] : memref<4x136x128xf32, #tpu.memory_space<vmem>>, vector<1x1x128xf32>
    %31 = vector.shape_cast %30 : vector<1x1x128xf32> to vector<1x128xf32>
    %cst_26 = arith.constant dense<0.000000e+00> : vector<8x128xf32>
    %32 = tpu.matmul %27, %29, %cst_26 {dimension_numbers = #tpu.dot_dimension_numbers<[1], [0], [0], [1], [0, 0, 1, 1], [], []>} : vector<8x128xf32>, vector<128x128xf32>, vector<8x128xf32> -> vector<8x128xf32>
    %33 = vector.broadcast %31 : vector<1x128xf32> to vector<8x128xf32>
    %34 = arith.addf %32, %33 : vector<8x128xf32>
    %c0_27 = arith.constant 0 : index
    %c0_28 = arith.constant 0 : index
    %35 = vector.load %arg3[%c0_27, %c0_28] : memref<8x128xf32, #tpu.memory_space<vmem>>, vector<8x128xf32>
    tpu.vector_store %arg3[%c0_27, %c0_28], %34 {strides = array<i32>} : memref<8x128xf32, #tpu.memory_space<vmem>>, vector<8x128xf32>,
    return
  }
  func.func @transform_0(%arg0: i32) -> (i32, i32) {
    %c0_i32 = arith.constant 0 : i32
    %c0_i32_0 = arith.constant 0 : i32
    return %arg0, %c0_i32 : i32, i32
  }
  func.func @transform_1(%arg0: i32) -> (i32, i32, i32) {
    %c0_i32 = arith.constant 0 : i32
    %c0_i32_0 = arith.constant 0 : i32
    %c0_i32_1 = arith.constant 0 : i32
    %c0_i32_2 = arith.constant 0 : i32
    return %c0_i32, %c0_i32_0, %c0_i32_1 : i32, i32, i32
  }
  func.func @transform_2(%arg0: i32) -> (i32, i32) {
    %c0_i32 = arith.constant 0 : i32
    %c0_i32_0 = arith.constant 0 : i32
    return %arg0, %c0_i32 : i32, i32
  }
}

</mosaic_0001>

<bundles_post_ra>
// kernel: _fcnet_padded_call.1
= control target key start
LH: loop header
LB: loop body
LE: loop exit
PB: predicated region body
PF: predicated region fallthrough
CT: control target
= control target key end

     0   :  { %7 = vsyncpa [#allocation3], 0  ;;  %s814_s0 = inlined_call_operand.hbm [shape: f32[8,128], index: 0, kind: input, shape index: {}]   ;;  %s815_s1 = inlined_call_operand.hbm [shape: f32[4,136,128], index: 1, kind: input, shape index: {}]   ;;  %s816_s2 = inlined_call_operand.hbm [shape: f32[8,128], index: 2, kind: output, shape index: {}]  }
   0x1   :  { %8 = vsyncpa [#allocation6], 0 }
   0x2   :  { %9 = vsyncpa [#allocation4], 0  ;;  %s711_s9 = smov [#allocation2]   ;;  %s712_s11 = smov [#allocation5]  }
   0x3   :  { %s16_s10 = sshll.u32 %s711_s9, 4  ;;  %s25_s12 = sshll.u32 %s712_s11, 4  ;;  %s17_s10 = int_to_ptr.vmem [resolvable:$true] %s16_s10  ;;  %s26_s12 = int_to_ptr.vmem [resolvable:$true] %s25_s12 }
   0x4   :  { %s653_s13 = scalar_lea.vmem %s17_s10, 128  ;;  %p658_p1 = scmp.lt.s32.totalorder %s17_s10, %s17_s10 }
   0x5   :  { %p654_p0 = scmp.ne.s32.totalorder %s17_s10, %s653_s13  ;;  %p659_p2 = scmp.lt.s32.totalorder %s653_s13, %s653_s13 }
   0x7   :  { %p660_p3 = por %p659_p2, %p658_p1 }
   0x9   :  { %p661_p4 = pnand %p660_p3, %p654_p0 }
   0xb   :  { %664 = shalt.err (!%p661_p4)
}
   0xc   :  { %19 = dma.hbm_to_vmem [thread:$0]  %s814_s0, 128, %s17_s10, [#allocation3]  }
   0xd   :  { %s673_s16 = scalar_lea.vmem %s26_s12, 8704  ;;  %p678_p6 = scmp.lt.s32.totalorder %s26_s12, %s26_s12 }
   0xe   :  { %p674_p5 = scmp.ne.s32.totalorder %s26_s12, %s673_s16  ;;  %p679_p7 = scmp.lt.s32.totalorder %s673_s16, %s673_s16 }
  0x10   :  { %p680_p8 = por %p679_p7, %p678_p6 }
  0x12   :  { %p681_p9 = pnand %p680_p8, %p674_p5 }
  0x14   :  { %684 = shalt.err (!%p681_p9)
}
  0x15   :  { %s713_s17 = smov 128   ;;  %s714_s18 = smov 8  }
  0x16   :  { %31 = dma.hbm_to_vmem [thread:$0]  %s815_s1, 8704, %s26_s12, [#allocation6], %s713_s17, %s713_s17, %s714_s18  }
  0x17   :  { %705 = dma.done.wait [#allocation3], 128  }
  0x18   :  { %706 = vsyncadd [#allocation3], 4294967168 }
  0x19   :  { %707 = dma.done.wait [#allocation6], 8704  }
  0x1a   :  { %708 = vsyncadd [#allocation6], 4294958592  ;;  %v715_v0 = vmov 0.0   ;;  %vm716_vm0 = vmmov 0   ;;  %v54_v1 = vld [vmem:[#allocation5 + $0x78] sm:$0xff]  ;;  %v53_v2 = vld [vmem:[#allocation5 + $0x70] sm:$0xff] }
  0x1b   :  { %498 = vmatprep.subr.mxu0 %v715_v0  ;;  %530 = vmatprep.mubr.msk.f32.mxu0 %vm716_vm0, %v715_v0  ;;  %v52_v3 = vld [vmem:[#allocation5 + $0x68] sm:$0xff]  ;;  %v51_v4 = vld [vmem:[#allocation5 + $0x60] sm:$0xff]  ;;  %v50_v6 = vld [vmem:[#allocation5 + $0x58] sm:$0xff]  ;;  %s717_s0 = smov [#allocation7]  }
  0x1c   :  { %533 = vmatprep.subr.mxu1 %v715_v0  ;;  %565 = vmatprep.mubr.msk.f32.mxu1 %vm716_vm0, %v715_v0  ;;  %v147_v5 = vld [vmem:[#allocation5 + $0x100] sm:$0xff]  ;;  %v146_v7 = vld [vmem:[#allocation5 + $0xf8] sm:$0xff]  ;;  %v145_v8 = vld [vmem:[#allocation5 + $0xf0] sm:$0xff]  ;;  %s416_s1 = sshll.u32 %s717_s0, 4  ;;  %s417_s1 = int_to_ptr.vmem [resolvable:$true] %s416_s1 }
  0x1d   :  { %499 = vmatpush3.msra.mxu0 %v54_v1  ;;  %534 = vmatpush3.msra.mxu1 %v147_v5  ;;  %v49_v9 = vld [vmem:[#allocation5 + $0x50] sm:$0xff]  ;;  %v144_v10 = vld [vmem:[#allocation5 + $0xe8] sm:$0xff]  ;;  %v143_v12 = vld [vmem:[#allocation5 + $0xe0] sm:$0xff]  ;;  %s685_s21 = scalar_lea.vmem %s417_s1, 128  ;;  %p690_p11 = scmp.lt.s32.totalorder %s417_s1, %s417_s1 }
  0x1e   :  { %500 = vmatprep.subr.mxu0 %v715_v0  ;;  %535 = vmatprep.subr.mxu1 %v715_v0  ;;  %v48_v11 = vld [vmem:[#allocation5 + $0x48] sm:$0xff]  ;;  %v47_v13 = vld [vmem:[#allocation5 + $0x40] sm:$0xff]  ;;  %v142_v14 = vld [vmem:[#allocation5 + $0xd8] sm:$0xff]  ;;  %p686_p10 = scmp.ne.s32.totalorder %s417_s1, %s685_s21  ;;  %p691_p12 = scmp.lt.s32.totalorder %s685_s21, %s685_s21 }
  0x1f   :  { %501 = vmatpush3.msra.mxu0 %v53_v2  ;;  %536 = vmatpush3.msra.mxu1 %v146_v7  ;;  %v46_v15 = vld [vmem:[#allocation5 + $0x38] sm:$0xff]  ;;  %v141_v16 = vld [vmem:[#allocation5 + $0xd0] sm:$0xff]  ;;  %v140_v18 = vld [vmem:[#allocation5 + $0xc8] sm:$0xff] }
  0x20   :  { %502 = vmatprep.subr.mxu0 %v715_v0  ;;  %537 = vmatprep.subr.mxu1 %v715_v0  ;;  %v45_v17 = vld [vmem:[#allocation5 + $0x30] sm:$0xff]  ;;  %v44_v19 = vld [vmem:[#allocation5 + $0x28] sm:$0xff]  ;;  %v139_v20 = vld [vmem:[#allocation5 + $0xc0] sm:$0xff]  ;;  %p692_p13 = por %p691_p12, %p690_p11 }
  0x21   :  { %503 = vmatpush3.msra.mxu0 %v52_v3  ;;  %538 = vmatpush3.msra.mxu1 %v145_v8  ;;  %v43_v21 = vld [vmem:[#allocation5 + $0x20] sm:$0xff]  ;;  %v138_v22 = vld [vmem:[#allocation5 + $0xb8] sm:$0xff]  ;;  %v137_v24 = vld [vmem:[#allocation5 + $0xb0] sm:$0xff] }
  0x22   :  { %504 = vmatprep.subr.mxu0 %v715_v0  ;;  %539 = vmatprep.subr.mxu1 %v715_v0  ;;  %v42_v23 = vld [vmem:[#allocation5 + $0x18] sm:$0xff]  ;;  %v41_v25 = vld [vmem:[#allocation5 + $0x10] sm:$0xff]  ;;  %v136_v26 = vld [vmem:[#allocation5 + $0xa8] sm:$0xff]  ;;  %p693_p0 = pnand %p692_p13, %p686_p10 }
  0x23   :  { %505 = vmatpush3.msra.mxu0 %v51_v4  ;;  %540 = vmatpush3.msra.mxu1 %v144_v10  ;;  %v40_v27 = vld [vmem:[#allocation5 + $0x8] sm:$0xff]  ;;  %v135_v28 = vld [vmem:[#allocation5 + $0xa0] sm:$0xff]  ;;  %v38_v30 = vld [vmem:[#allocation2] sm:$0xff] }
  0x24   :  { %506 = vmatprep.subr.mxu0 %v715_v0  ;;  %541 = vmatprep.subr.mxu1 %v715_v0  ;;  %v39_v29 = vld [vmem:[#allocation5] sm:$0xff]  ;;  %v134_v31 = vld [vmem:[#allocation5 + $0x98] sm:$0xff]  ;;  %v133_v32 = vld [vmem:[#allocation5 + $0x90] sm:$0xff] }
  0x25   :  { %507 = vmatpush3.msra.mxu0 %v50_v6  ;;  %542 = vmatpush3.msra.mxu1 %v143_v12  ;;  %v132_v33 = vld [vmem:[#allocation5 + $0x88] sm:$0xff]  ;;  %v239_v35 = vld [vmem:[#allocation5 + $0x180] sm:$0xff]  ;;  %v238_v36 = vld [vmem:[#allocation5 + $0x178] sm:$0xff] }
  0x26   :  { %508 = vmatprep.subr.mxu0 %v715_v0  ;;  %543 = vmatprep.subr.mxu1 %v715_v0  ;;  %v240_v34 = vld [vmem:[#allocation5 + $0x188] sm:$0xff]  ;;  %v237_v37 = vld [vmem:[#allocation5 + $0x170] sm:$0xff]  ;;  %v235_v39 = vld [vmem:[#allocation5 + $0x160] sm:$0xff] }
  0x27   :  { %509 = vmatpush3.msra.mxu0 %v49_v9  ;;  %544 = vmatpush3.msra.mxu1 %v142_v14  ;;  %v236_v38 = vld [vmem:[#allocation5 + $0x168] sm:$0xff]  ;;  %v234_v40 = vld [vmem:[#allocation5 + $0x158] sm:$0xff]  ;;  %v233_v41 = vld [vmem:[#allocation5 + $0x150] sm:$0xff] }
  0x28   :  { %510 = vmatprep.subr.mxu0 %v715_v0  ;;  %545 = vmatprep.subr.mxu1 %v715_v0  ;;  %v232_v42 = vld [vmem:[#allocation5 + $0x148] sm:$0xff]  ;;  %v231_v43 = vld [vmem:[#allocation5 + $0x140] sm:$0xff]  ;;  %v230_v44 = vld [vmem:[#allocation5 + $0x138] sm:$0xff] }
  0x29   :  { %511 = vmatpush3.msra.mxu0 %v48_v11  ;;  %546 = vmatpush3.msra.mxu1 %v141_v16  ;;  %v229_v45 = vld [vmem:[#allocation5 + $0x130] sm:$0xff]  ;;  %v228_v46 = vld [vmem:[#allocation5 + $0x128] sm:$0xff]  ;;  %v426_v47 = vld [vmem:[#allocation5 + $0x80] ss:$0 sm:$0xff] }
  0x2a   :  { %512 = vmatprep.subr.mxu0 %v715_v0  ;;  %547 = vmatprep.subr.mxu1 %v715_v0  ;;  %v227_v52 = vld [vmem:[#allocation5 + $0x120] sm:$0xff]  ;;  %v226_v53 = vld [vmem:[#allocation5 + $0x118] sm:$0xff]  ;;  %v225_v54 = vld [vmem:[#allocation5 + $0x110] sm:$0xff] }
  0x2b   :  { %513 = vmatpush3.msra.mxu0 %v47_v13  ;;  %548 = vmatpush3.msra.mxu1 %v140_v18  ;;  %v333_v55 = vld [vmem:[#allocation5 + $0x210] sm:$0xff]  ;;  %v332_v56 = vld [vmem:[#allocation5 + $0x208] sm:$0xff]  ;;  %v331_v57 = vld [vmem:[#allocation5 + $0x200] sm:$0xff] }
  0x2c   :  { %514 = vmatprep.subr.mxu0 %v715_v0  ;;  %549 = vmatprep.subr.mxu1 %v715_v0  ;;  %v330_v58 = vld [vmem:[#allocation5 + $0x1f8] sm:$0xff]  ;;  %v329_v59 = vld [vmem:[#allocation5 + $0x1f0] sm:$0xff]  ;;  %v328_v60 = vld [vmem:[#allocation5 + $0x1e8] sm:$0xff] }
  0x2d   :  { %515 = vmatpush3.msra.mxu0 %v46_v15  ;;  %550 = vmatpush3.msra.mxu1 %v139_v20  ;;  %v327_v61 = vld [vmem:[#allocation5 + $0x1e0] sm:$0xff]  ;;  %v326_v62 = vld [vmem:[#allocation5 + $0x1d8] sm:$0xff]  ;;  %v325_v63 = vld [vmem:[#allocation5 + $0x1d0] sm:$0xff] }
  0x2e   :  { %516 = vmatprep.subr.mxu0 %v715_v0  ;;  %551 = vmatprep.subr.mxu1 %v715_v0  ;;  %v324_v1 = vld [vmem:[#allocation5 + $0x1c8] sm:$0xff]  ;;  %v323_v2 = vld [vmem:[#allocation5 + $0x1c0] sm:$0xff]  ;;  %v322_v3 = vld [vmem:[#allocation5 + $0x1b8] sm:$0xff] }
  0x2f   :  { %517 = vmatpush3.msra.mxu0 %v45_v17  ;;  %552 = vmatpush3.msra.mxu1 %v138_v22  ;;  %v321_v4 = vld [vmem:[#allocation5 + $0x1b0] sm:$0xff]  ;;  %v427_v5 = vld [vmem:[#allocation5 + $0x108] ss:$0 sm:$0xff]  ;;  %v319_v11 = vld [vmem:[#allocation5 + $0x1a0] sm:$0xff] }
  0x30   :  { %518 = vmatprep.subr.mxu0 %v715_v0  ;;  %553 = vmatprep.subr.mxu1 %v715_v0  ;;  %v320_v10 = vld [vmem:[#allocation5 + $0x1a8] sm:$0xff]  ;;  %v318_v12 = vld [vmem:[#allocation5 + $0x198] sm:$0xff]  ;;  %v428_v13 = vld [vmem:[#allocation5 + $0x190] ss:$0 sm:$0xff] }
  0x31   :  { %519 = vmatpush3.msra.mxu0 %v44_v19  ;;  %554 = vmatpush3.msra.mxu1 %v137_v24  ;;  %v429_v18 = vld [vmem:[#allocation5 + $0x218] ss:$0 sm:$0xff] }
  0x32   :  { %520 = vmatprep.subr.mxu0 %v715_v0  ;;  %555 = vmatprep.subr.mxu1 %v715_v0 }
  0x33   :  { %521 = vmatpush3.msra.mxu0 %v43_v21  ;;  %556 = vmatpush3.msra.mxu1 %v136_v26 }
  0x34   :  { %522 = vmatprep.subr.mxu0 %v715_v0  ;;  %557 = vmatprep.subr.mxu1 %v715_v0 }
  0x35   :  { %523 = vmatpush3.msra.mxu0 %v42_v23  ;;  %558 = vmatpush3.msra.mxu1 %v135_v28 }
  0x36   :  { %524 = vmatprep.subr.mxu0 %v715_v0  ;;  %559 = vmatprep.subr.mxu1 %v715_v0 }
  0x37   :  { %525 = vmatpush3.msra.mxu0 %v41_v25  ;;  %560 = vmatpush3.msra.mxu1 %v134_v31 }
  0x38   :  { %526 = vmatprep.subr.mxu0 %v715_v0  ;;  %561 = vmatprep.subr.mxu1 %v715_v0 }
  0x39   :  { %527 = vmatpush3.msra.mxu0 %v40_v27  ;;  %562 = vmatpush3.msra.mxu1 %v133_v32 }
  0x3a   :  { %528 = vmatprep.subr.mxu0 %v715_v0  ;;  %563 = vmatprep.subr.mxu1 %v715_v0 }
  0x3b   :  { %529 = vmatpush3.msra.mxu0 %v39_v29  ;;  %564 = vmatpush3.msra.mxu1 %v132_v33 }
  0x3c   :  { %531 = vmatmul.mubr.f32.vlgmr.msra.gmra.mxu0 %v38_v30  ;;  %568 = vmatprep.subr.mxu0 %v715_v0 }
  0x3d   :  { %600 = vmatprep.mubr.msk.f32.mxu0 %vm716_vm0, %v715_v0  ;;  %603 = vmatprep.subr.mxu1 %v715_v0 }
  0x3e   :  { %569 = vmatpush3.msra.mxu0 %v240_v34 }
  0x3f   :  { %570 = vmatprep.subr.mxu0 %v715_v0 }
  0x40   :  { %571 = vmatpush3.msra.mxu0 %v239_v35 }
  0x41   :  { %572 = vmatprep.subr.mxu0 %v715_v0 }
  0x42   :  { %573 = vmatpush3.msra.mxu0 %v238_v36 }
  0x43   :  { %574 = vmatprep.subr.mxu0 %v715_v0 }
  0x44   :  { %575 = vmatpush3.msra.mxu0 %v237_v37 }
  0x45   :  { %576 = vmatprep.subr.mxu0 %v715_v0 }
  0x46   :  { %577 = vmatpush3.msra.mxu0 %v236_v38 }
  0x47   :  { %578 = vmatprep.subr.mxu0 %v715_v0 }
  0x48   :  { %579 = vmatpush3.msra.mxu0 %v235_v39 }
  0x49   :  { %580 = vmatprep.subr.mxu0 %v715_v0 }
  0x4a   :  { %581 = vmatpush3.msra.mxu0 %v234_v40 }
  0x4b   :  { %582 = vmatprep.subr.mxu0 %v715_v0 }
  0x4c   :  { %583 = vmatpush3.msra.mxu0 %v233_v41 }
  0x4d   :  { %584 = vmatprep.subr.mxu0 %v715_v0 }
  0x4e   :  { %585 = vmatpush3.msra.mxu0 %v232_v42 }
  0x4f   :  { %586 = vmatprep.subr.mxu0 %v715_v0 }
  0x50   :  { %587 = vmatpush3.msra.mxu0 %v231_v43 }
  0x51   :  { %588 = vmatprep.subr.mxu0 %v715_v0 }
  0x52   :  { %589 = vmatpush3.msra.mxu0 %v230_v44 }
  0x53   :  { %590 = vmatprep.subr.mxu0 %v715_v0 }
  0x54   :  { %591 = vmatpush3.msra.mxu0 %v229_v45 }
  0x55   :  { %592 = vmatprep.subr.mxu0 %v715_v0 }
  0x56   :  { %593 = vmatpush3.msra.mxu0 %v228_v46 }
  0x57   :  { %594 = vmatprep.subr.mxu0 %v715_v0 }
  0x58   :  { %595 = vmatpush3.msra.mxu0 %v227_v52 }
  0x59   :  { %596 = vmatprep.subr.mxu0 %v715_v0 }
  0x5a   :  { %597 = vmatpush3.msra.mxu0 %v226_v53 }
  0x5b   :  { %598 = vmatprep.subr.mxu0 %v715_v0 }
  0x5c   :  { %599 = vmatpush3.msra.mxu0 %v225_v54 }
  0xfc   :  { %v126_v48 = vpop.f32.mrf.mxu0 }
  0xfd   :  { %v127_v49 = vadd.f32 %v426_v47, %v126_v48 }
  0xfe   :  { %v532_v50 = vpop.f32.mrf.mxu0 }
  0xff   :  { %v130_v51 = vmax.f32 %v127_v49, 0.0 }
 0x101   :  { %566 = vmatmul.mubr.f32.vlgmr.msra.gmra.mxu1 %v130_v51 }
 0x102   :  { %635 = vmatprep.mubr.msk.f32.mxu1 %vm716_vm0, %v715_v0  ;;  %604 = vmatpush3.msra.mxu1 %v333_v55 }
 0x103   :  { %605 = vmatprep.subr.mxu1 %v715_v0 }
 0x104   :  { %606 = vmatpush3.msra.mxu1 %v332_v56 }
 0x105   :  { %607 = vmatprep.subr.mxu1 %v715_v0 }
 0x106   :  { %608 = vmatpush3.msra.mxu1 %v331_v57 }
 0x107   :  { %609 = vmatprep.subr.mxu1 %v715_v0 }
 0x108   :  { %610 = vmatpush3.msra.mxu1 %v330_v58 }
 0x109   :  { %611 = vmatprep.subr.mxu1 %v715_v0 }
 0x10a   :  { %612 = vmatpush3.msra.mxu1 %v329_v59 }
 0x10b   :  { %613 = vmatprep.subr.mxu1 %v715_v0 }
 0x10c   :  { %614 = vmatpush3.msra.mxu1 %v328_v60 }
 0x10d   :  { %615 = vmatprep.subr.mxu1 %v715_v0 }
 0x10e   :  { %616 = vmatpush3.msra.mxu1 %v327_v61 }
 0x10f   :  { %617 = vmatprep.subr.mxu1 %v715_v0 }
 0x110   :  { %618 = vmatpush3.msra.mxu1 %v326_v62 }
 0x111   :  { %619 = vmatprep.subr.mxu1 %v715_v0 }
 0x112   :  { %620 = vmatpush3.msra.mxu1 %v325_v63 }
 0x113   :  { %621 = vmatprep.subr.mxu1 %v715_v0 }
 0x114   :  { %622 = vmatpush3.msra.mxu1 %v324_v1 }
 0x115   :  { %623 = vmatprep.subr.mxu1 %v715_v0 }
 0x116   :  { %624 = vmatpush3.msra.mxu1 %v323_v2 }
 0x117   :  { %625 = vmatprep.subr.mxu1 %v715_v0 }
 0x118   :  { %626 = vmatpush3.msra.mxu1 %v322_v3 }
 0x119   :  { %627 = vmatprep.subr.mxu1 %v715_v0 }
 0x11a   :  { %628 = vmatpush3.msra.mxu1 %v321_v4 }
 0x11b   :  { %629 = vmatprep.subr.mxu1 %v715_v0 }
 0x11c   :  { %630 = vmatpush3.msra.mxu1 %v320_v10 }
 0x11d   :  { %631 = vmatprep.subr.mxu1 %v715_v0 }
 0x11e   :  { %632 = vmatpush3.msra.mxu1 %v319_v11 }
 0x11f   :  { %633 = vmatprep.subr.mxu1 %v715_v0 }
 0x120   :  { %634 = vmatpush3.msra.mxu1 %v318_v12 }
 0x1c1   :  { %v219_v6 = vpop.f32.mrf.mxu1 }
 0x1c2   :  { %v220_v7 = vadd.f32 %v427_v5, %v219_v6 }
 0x1c3   :  { %v567_v8 = vpop.f32.mrf.mxu1 }
 0x1c4   :  { %v223_v9 = vmax.f32 %v220_v7, 0.0 }
 0x1c6   :  { %601 = vmatmul.mubr.f32.vlgmr.msra.gmra.mxu0 %v223_v9 }
 0x286   :  { %v312_v14 = vpop.f32.mrf.mxu0 }
 0x287   :  { %v313_v15 = vadd.f32 %v428_v13, %v312_v14 }
 0x288   :  { %v602_v16 = vpop.f32.mrf.mxu0 }
 0x289   :  { %v316_v17 = vmax.f32 %v313_v15, 0.0 }
 0x28b   :  { %636 = vmatmul.mubr.f32.vlgmr.msra.gmra.mxu1 %v316_v17 }
 0x34b   :  { %v405_v19 = vpop.f32.mrf.mxu1 }
 0x34c   :  { %v406_v20 = vadd.f32 %v429_v18, %v405_v19 }
 0x34d   :  { %v637_v21 = vpop.f32.mrf.mxu1 }
 0x34e   :  { %409 = vst [vmem:[#allocation7] sm:$0xff] %v406_v20 }
 0x34f   :  { %696 = shalt.err (!%p693_p0)
}
 0x350   :  { %419 = dma.vmem_to_hbm [thread:$0]  %s417_s1, 128, %s816_s2, [#allocation4]  }
 0x351   :  { %709 = dma.done.wait [#allocation4], 128  }
 0x352   :  { %710 = vsyncadd [#allocation4], 4294967168 }
 0x353   :  { %423 = vsyncpa [#allocation3], 1 }
 0x354   :  { %424 = vsyncpa [#allocation6], 1 }
 0x355   :  { %425 = vsyncpa [#allocation4], 1 }

</bundles_post_ra>
